<compile_context>
chip_gen: v5e
topology: v5e:2x2
jax: 0.10.0
libtpu: 0.0.40
codegen_flags: <defaults>
</compile_context>

<pallas_src>
import functools

import numpy as np

import jax
import jax.numpy as jnp
from jax.experimental import pallas as pl
from jax.experimental.pallas import tpu as pltpu


# ----------------------------------------------------------------------------
# Host-side (compile-time) constants: bilinear interpolation matrices.
# ----------------------------------------------------------------------------
def _bilinear_matrix_np(in_size, out_size):
    """(out_size, in_size) matrix reproducing F.interpolate(mode='bilinear',
    align_corners=False) along one axis (src clamp at 0, index clamp at in-1)."""
    scale = in_size / out_size
    dst = np.arange(out_size, dtype=np.float64)
    src = np.maximum((dst + 0.5) * scale - 0.5, 0.0)
    i0 = np.minimum(np.floor(src).astype(np.int64), in_size - 1)
    i1 = np.minimum(i0 + 1, in_size - 1)
    w1 = (src - i0).astype(np.float32)
    w0 = (np.float32(1.0) - w1).astype(np.float32)
    m = np.zeros((out_size, in_size), dtype=np.float32)
    m[np.arange(out_size), i0] += w0
    m[np.arange(out_size), i1] += w1
    return m


@functools.lru_cache(maxsize=None)
def _bilinear_kron_np(h_in, w_in, h_out, w_out):
    """B[(oh*w_in + ow), (y*w_out + x)] = Wh[y, oh] * Ww[x, ow]  -> shape (h_in*w_in, h_out*w_out).
    Lets the whole 2-D bilinear upsample run as a single matmul with flattened spatial lanes."""
    wh = _bilinear_matrix_np(h_in, h_out)     # (h_out, h_in)
    ww = _bilinear_matrix_np(w_in, w_out)     # (w_out, w_in)
    return np.kron(wh.T, ww.T).astype(np.float32)


# ----------------------------------------------------------------------------
# Fused kernel: conv(3x3/s2)+ReLU  ->  1x1 conv  ->  bilinear upsample
# All operands channels-on-rows / flattened-spatial-on-lanes, so every stage is a
# plain matmul and the final store is lane-dense (last dim = H*W).
# ----------------------------------------------------------------------------
def _fused_seg_kernel(cols_ref, wbt_ref, bb_ref, wc_ref, bc_ref, bmat_ref, o_ref):
    cols = cols_ref[0]                                                   # (9*Cin, Ho*Wo) bf16
    # backbone conv as matmul, f32 accumulation; bias + ReLU in f32
    feat = jnp.dot(wbt_ref[...], cols, preferred_element_type=jnp.float32)   # (Cmid, Ho*Wo)
    feat = jnp.maximum(feat + bb_ref[...], 0.0)
    # classifier 1x1 conv
    logits = jnp.dot(wc_ref[...], feat.astype(jnp.bfloat16),
                     preferred_element_type=jnp.float32) + bc_ref[...]       # (ncls, Ho*Wo)
    # bilinear upsample: one matmul against the Kronecker interpolation matrix
    out = jnp.dot(logits.astype(jnp.bfloat16), bmat_ref[...],
                  preferred_element_type=jnp.float32)                        # (ncls, H*W) lane-dense
    o_ref[0] = out.astype(o_ref.dtype)


def _fused_forward(cols, wbt, bb, wc, bc, bmat):
    n, kc, s = cols.shape
    cmid = wbt.shape[0]
    ncls = wc.shape[0]
    hw = bmat.shape[1]
    return pl.pallas_call(
        _fused_seg_kernel,
        out_shape=jax.ShapeDtypeStruct((n, ncls, hw), jnp.float32),
        grid=(n,),
        in_specs=[
            pl.BlockSpec((1, kc, s), lambda b: (b, 0, 0)),     # im2col'd input (per batch)
            pl.BlockSpec((cmid, kc), lambda b: (0, 0)),        # backbone weights
            pl.BlockSpec((cmid, 1), lambda b: (0, 0)),         # backbone bias (f32)
            pl.BlockSpec((ncls, cmid), lambda b: (0, 0)),      # classifier weights
            pl.BlockSpec((ncls, 1), lambda b: (0, 0)),         # classifier bias (f32)
            pl.BlockSpec((s, hw), lambda b: (0, 0)),           # bilinear Kronecker matrix
        ],
        out_specs=pl.BlockSpec((1, ncls, hw), lambda b: (b, 0, 0)),
        compiler_params=pltpu.CompilerParams(
            dimension_semantics=("parallel",),                 # >=2 grid steps -> v7x megacore
            vmem_limit_bytes=32 * 1024 * 1024,                 # explicit, portable to v7x's 64MiB VMEM
        ),
    )(cols, wbt, bb, wc, bc, bmat)


# ----------------------------------------------------------------------------
# Plain-JAX glue (fused under jit): patch extraction + parameter reshapes.
# ----------------------------------------------------------------------------
def _im2col_t_3x3_s2_p1(x_nchw):
    """3x3 conv, stride 2, pad 1 -> (N, 9*Cin, Ho*Wo); rows ordered (kh, kw, cin),
    columns are flattened output spatial (oh*Wo + ow)."""
    n, c, h, w = x_nchw.shape
    ho, wo = h // 2, w // 2
    xp = jnp.pad(x_nchw, ((0, 0), (0, 0), (1, 1), (1, 1)))
    taps = [xp[:, :, dh:dh + 2 * ho:2, dw:dw + 2 * wo:2]
            for dh in range(3) for dw in range(3)]             # each (N, C, Ho, Wo)
    p = jnp.stack(taps, axis=1)                                # (N, 9, C, Ho, Wo)
    return p.reshape(n, 9 * c, ho * wo), ho, wo


@jax.jit
def segmentation_model_forward(x_nchw, params):
    """Equivalent of _SegmentationModel.forward for the synthetic backbone/classifier."""
    n, cin, h, w = x_nchw.shape
    wb, bb, wc, bc = params["wb"], params["bb"], params["wc"], params["bc"]
    cmid = wb.shape[0]
    ncls = wc.shape[0]

    cols, ho, wo = _im2col_t_3x3_s2_p1(x_nchw)                           # (N, 9*Cin, Ho*Wo)
    wbt = jnp.transpose(wb, (0, 2, 3, 1)).reshape(cmid, 9 * cin)         # (Cmid, 9*Cin), (kh,kw,cin)
    bmat = jnp.asarray(_bilinear_kron_np(ho, wo, h, w), dtype=jnp.bfloat16)  # (Ho*Wo, H*W), hoisted const

    out_flat = _fused_forward(
        cols.astype(jnp.bfloat16),
        wbt.astype(jnp.bfloat16),
        bb.reshape(cmid, 1).astype(jnp.float32),
        wc.reshape(ncls, cmid).astype(jnp.bfloat16),
        bc.reshape(ncls, 1).astype(jnp.float32),
        bmat,
    )                                                                    # (N, ncls, H*W)
    return out_flat.reshape(n, ncls, h, w)


def _reference_forward(x, params, h, w):
    """Pure-JAX f32 reference (conv -> relu -> 1x1 conv -> bilinear), for validation."""
    wb, bb, wc, bc = params["wb"], params["bb"], params["wc"], params["bc"]
    f = jax.lax.conv_general_dilated(x, wb, window_strides=(2, 2),
                                     padding=((1, 1), (1, 1)),
                                     dimension_numbers=("NCHW", "OIHW", "NCHW"))
    f = jax.nn.relu(f + bb[None, :, None, None])
    l = jax.lax.conv_general_dilated(f, wc, window_strides=(1, 1), padding="VALID",
                                     dimension_numbers=("NCHW", "OIHW", "NCHW"))
    l = l + bc[None, :, None, None]
    ho, wo = f.shape[2], f.shape[3]
    wh = jnp.asarray(_bilinear_matrix_np(ho, h))   # (H, Ho)
    ww = jnp.asarray(_bilinear_matrix_np(wo, w))   # (W, Wo)
    return jnp.einsum("yh,nchw,xw->ncyx", wh, l, ww)


if __name__ == "__main__":
    key = jax.random.PRNGKey(0)
    k_x, k_wb, k_bb, k_wc, k_bc = jax.random.split(key, 5)

    N, Cin, H, W = 2, 4, 16, 16
    Cmid, num_classes = 8, 3

    x = jax.random.normal(k_x, (N, Cin, H, W), dtype=jnp.float32)
    params = {
        "wb": 0.1 * jax.random.normal(k_wb, (Cmid, Cin, 3, 3), dtype=jnp.float32),
        "bb": 0.1 * jax.random.normal(k_bb, (Cmid,), dtype=jnp.float32),
        "wc": 0.1 * jax.random.normal(k_wc, (num_classes, Cmid, 1, 1), dtype=jnp.float32),
        "bc": 0.1 * jax.random.normal(k_bc, (num_classes,), dtype=jnp.float32),
    }

    out = segmentation_model_forward(x, params)
    out = jax.block_until_ready(out)
    assert out.shape == (N, num_classes, H, W), out.shape

    ref = _reference_forward(x, params, H, W)
    assert bool(jnp.allclose(out, ref, rtol=5e-2, atol=5e-2)), "mismatch vs f32 reference"

    print("KERNEL_OK")
</pallas_src>

<mosaic_0001>
module attributes {stable_mosaic.version = 11 : i64} {
  func.func @_fused_seg_kernel(%arg0: i32, %arg1: memref<1x36x64xbf16, #tpu.memory_space<vmem>>, %arg2: memref<8x36xbf16, #tpu.memory_space<vmem>>, %arg3: memref<8x1xf32, #tpu.memory_space<vmem>>, %arg4: memref<3x8xbf16, #tpu.memory_space<vmem>>, %arg5: memref<3x1xf32, #tpu.memory_space<vmem>>, %arg6: memref<64x256xbf16, #tpu.memory_space<vmem>>, %arg7: memref<1x3x256xf32, #tpu.memory_space<vmem>>) attributes {dimension_semantics = [#tpu.dimension_semantics<parallel>], iteration_bounds = array<i64: 2>, scalar_prefetch = 0 : i64, scratch_operands = 0 : i64, tpu.core_type = #tpu.core_type<tc>, window_params = [{transform_indices = @transform_0, window_bounds = array<i64: 1, 36, 64>}, {pipeline_mode = #tpu.pipeline_mode<synchronous>, transform_indices = @transform_1, window_bounds = array<i64: 8, 36>}, {pipeline_mode = #tpu.pipeline_mode<synchronous>, transform_indices = @transform_2, window_bounds = array<i64: 8, 1>}, {pipeline_mode = #tpu.pipeline_mode<synchronous>, transform_indices = @transform_3, window_bounds = array<i64: 3, 8>}, {pipeline_mode = #tpu.pipeline_mode<synchronous>, transform_indices = @transform_4, window_bounds = array<i64: 3, 1>}, {pipeline_mode = #tpu.pipeline_mode<synchronous>, transform_indices = @transform_5, window_bounds = array<i64: 64, 256>}, {transform_indices = @transform_6, window_bounds = array<i64: 1, 3, 256>}]} {
    %c0 = arith.constant 0 : index
    %c0_0 = arith.constant 0 : index
    %c0_1 = arith.constant 0 : index
    %0 = vector.load %arg1[%c0, %c0_0, %c0_1] : memref<1x36x64xbf16, #tpu.memory_space<vmem>>, vector<1x36x64xbf16>
    %1 = vector.shape_cast %0 : vector<1x36x64xbf16> to vector<36x64xbf16>
    %c0_2 = arith.constant 0 : index
    %c0_3 = arith.constant 0 : index
    %2 = vector.load %arg2[%c0_2, %c0_3] : memref<8x36xbf16, #tpu.memory_space<vmem>>, vector<8x36xbf16>
    %cst = arith.constant dense<0.000000e+00> : vector<8x64xf32>
    %3 = tpu.matmul %2, %1, %cst {dimension_numbers = #tpu.dot_dimension_numbers<[1], [0], [0], [1], [0, 0, 1, 1], [], []>} : vector<8x36xbf16>, vector<36x64xbf16>, vector<8x64xf32> -> vector<8x64xf32>
    %c0_4 = arith.constant 0 : index
    %c0_5 = arith.constant 0 : index
    %4 = vector.load %arg3[%c0_4, %c0_5] : memref<8x1xf32, #tpu.memory_space<vmem>>, vector<8x1xf32>
    %5 = vector.broadcast %4 : vector<8x1xf32> to vector<8x64xf32>
    %6 = arith.addf %3, %5 : vector<8x64xf32>
    %cst_6 = arith.constant 0.000000e+00 : f32
    %7 = vector.broadcast %cst_6 : f32 to vector<8x64xf32>
    %8 = arith.maximumf %6, %7 : vector<8x64xf32>
    %c0_7 = arith.constant 0 : index
    %c0_8 = arith.constant 0 : index
    %9 = vector.load %arg4[%c0_7, %c0_8] : memref<3x8xbf16, #tpu.memory_space<vmem>>, vector<3x8xbf16>
    %10 = arith.truncf %8 : vector<8x64xf32> to vector<8x64xbf16>
    %cst_9 = arith.constant dense<0.000000e+00> : vector<3x64xf32>
    %11 = tpu.matmul %9, %10, %cst_9 {dimension_numbers = #tpu.dot_dimension_numbers<[1], [0], [0], [1], [0, 0, 1, 1], [], []>} : vector<3x8xbf16>, vector<8x64xbf16>, vector<3x64xf32> -> vector<3x64xf32>
    %c0_10 = arith.constant 0 : index
    %c0_11 = arith.constant 0 : index
    %12 = vector.load %arg5[%c0_10, %c0_11] : memref<3x1xf32, #tpu.memory_space<vmem>>, vector<3x1xf32>
    %13 = vector.broadcast %12 : vector<3x1xf32> to vector<3x64xf32>
    %14 = arith.addf %11, %13 : vector<3x64xf32>
    %15 = arith.truncf %14 : vector<3x64xf32> to vector<3x64xbf16>
    %c0_12 = arith.constant 0 : index
    %c0_13 = arith.constant 0 : index
    %16 = vector.load %arg6[%c0_12, %c0_13] : memref<64x256xbf16, #tpu.memory_space<vmem>>, vector<64x256xbf16>
    %cst_14 = arith.constant dense<0.000000e+00> : vector<3x256xf32>
    %17 = tpu.matmul %15, %16, %cst_14 {dimension_numbers = #tpu.dot_dimension_numbers<[1], [0], [0], [1], [0, 0, 1, 1], [], []>} : vector<3x64xbf16>, vector<64x256xbf16>, vector<3x256xf32> -> vector<3x256xf32>
    %c0_15 = arith.constant 0 : index
    %c0_16 = arith.constant 0 : index
    %c0_17 = arith.constant 0 : index
    %18 = vector.load %arg7[%c0_15, %c0_16, %c0_17] : memref<1x3x256xf32, #tpu.memory_space<vmem>>, vector<1x3x256xf32>
    %19 = vector.shape_cast %18 : vector<1x3x256xf32> to vector<3x256xf32>
    %20 = vector.shape_cast %17 : vector<3x256xf32> to vector<1x3x256xf32>
    tpu.vector_store %arg7[%c0_15, %c0_16, %c0_17], %20 {strides = array<i32>} : memref<1x3x256xf32, #tpu.memory_space<vmem>>, vector<1x3x256xf32>,
    return
  }
  func.func @transform_0(%arg0: i32) -> (i32, i32, i32) {
    %c0_i32 = arith.constant 0 : i32
    %c0_i32_0 = arith.constant 0 : i32
    %c0_i32_1 = arith.constant 0 : i32
    return %arg0, %c0_i32, %c0_i32_0 : i32, i32, i32
  }
  func.func @transform_1(%arg0: i32) -> (i32, i32) {
    %c0_i32 = arith.constant 0 : i32
    %c0_i32_0 = arith.constant 0 : i32
    %c0_i32_1 = arith.constant 0 : i32
    return %c0_i32, %c0_i32_0 : i32, i32
  }
  func.func @transform_2(%arg0: i32) -> (i32, i32) {
    %c0_i32 = arith.constant 0 : i32
    %c0_i32_0 = arith.constant 0 : i32
    %c0_i32_1 = arith.constant 0 : i32
    return %c0_i32, %c0_i32_0 : i32, i32
  }
  func.func @transform_3(%arg0: i32) -> (i32, i32) {
    %c0_i32 = arith.constant 0 : i32
    %c0_i32_0 = arith.constant 0 : i32
    %c0_i32_1 = arith.constant 0 : i32
    return %c0_i32, %c0_i32_0 : i32, i32
  }
  func.func @transform_4(%arg0: i32) -> (i32, i32) {
    %c0_i32 = arith.constant 0 : i32
    %c0_i32_0 = arith.constant 0 : i32
    %c0_i32_1 = arith.constant 0 : i32
    return %c0_i32, %c0_i32_0 : i32, i32
  }
  func.func @transform_5(%arg0: i32) -> (i32, i32) {
    %c0_i32 = arith.constant 0 : i32
    %c0_i32_0 = arith.constant 0 : i32
    %c0_i32_1 = arith.constant 0 : i32
    return %c0_i32, %c0_i32_0 : i32, i32
  }
  func.func @transform_6(%arg0: i32) -> (i32, i32, i32) {
    %c0_i32 = arith.constant 0 : i32
    %c0_i32_0 = arith.constant 0 : i32
    %c0_i32_1 = arith.constant 0 : i32
    return %arg0, %c0_i32, %c0_i32_0 : i32, i32, i32
  }
}

</mosaic_0001>

<bundles_post_ra>
// kernel: segmentation_model_forward.1
= control target key start
LH: loop header
LB: loop body
LE: loop exit
PB: predicated region body
PF: predicated region fallthrough
CT: control target
= control target key end

     0   :  { %s591_s21 = smov 0   ;;  %s674_s0 = inlined_call_operand.vmem [shape: bf16[2,36,64], index: 0, kind: input, shape index: {}]   ;;  %s675_s1 = inlined_call_operand.vmem [shape: bf16[8,36], index: 1, kind: input, shape index: {}]   ;;  %s676_s2 = inlined_call_operand.vmem [shape: f32[8,1], index: 2, kind: input, shape index: {}]   ;;  %s677_s3 = inlined_call_operand.vmem [shape: bf16[3,8], index: 3, kind: input, shape index: {}]   ;;  %s678_s4 = inlined_call_operand.vmem [shape: f32[3,1], index: 4, kind: input, shape index: {}]   ;;  %s679_s5 = inlined_call_operand.vmem [shape: bf16[64,256], index: 5, kind: input, shape index: {}]   ;;  %s680_s6 = inlined_call_operand.vmem [shape: f32[2,3,256], index: 6, kind: output, shape index: {}]  }
   0x1 LB: > { %s471_s22 = sadd.s32 4294967295, %s553_s21   ;;  %p475_p0 = scmp.ge.s32.totalorder %s553_s21, 1  ;;  %s553_s21 = sphi %s591_s21, %s16_s21  }
   0x2   : > { %p212_p1 = scmp.lt.s32.totalorder %s553_s21, 3 }
   0x4   : > { %p213_p2 = pnand %p475_p0, %p212_p1 }
   0x5   : > { %p242_p3 = scmp.lt.s32.totalorder (!%p213_p2), %s471_s22, 1 }
   0x6   : > { %216 = sbr.rel (%p213_p2) target bundleno = 438 (0x1b6), region = 44 }
   0xb   : > { %v555_v0 = vmov 0   ;;  %v259_v1 = vld [vmem:[%s676_s2] sm:$0xff]  ;;  %s682_s22 = smov (!%p242_p3, %s471_s22), 1  ;;  %vm284_vm0 = vcmask 1041408   ;;  %vm280_vm1 = vcmask 293888   ;;  %vm314_vm2 = vcmask 1043456  }
   0xc   : > { %546 = vset.pattern.permute.xlu0 %v555_v0  ;;  %s536_s25 = smul.u32 20, %s682_s22  ;;  %v304_v3 = vld [vmem:[%s678_s4] sm:$0x7]  ;;  %v515_v10 = vld [vmem:[%s679_s5 + $0x30] sm:$0xf]  ;;  %vm310_vm3 = vcmask 64512  }
   0xd   : > { %262 = vperm.xlu0 %546, %v259_v1   ;;  %v258_v9 = vld [vmem:[%s675_s1] sm:$0xf]  ;;  %v535_v11 = vld [vmem:[%s679_s5 + $0x34] sm:$0xf0]  ;;  %v534_v12 = vld [vmem:[%s679_s5 + $0x34] sm:$0xf] }
   0xe   : > { %s246_s28 = scalar_lea.vmem %s674_s0, %s536_s25  ;;  %v516_v13 = vor.u32 %v535_v11, %v515_v10  ;;  %v517_v14 = vld [vmem:[%s679_s5 + $0x38] sm:$0xf0]  ;;  %v507_v15 = vld [vmem:[%s679_s5 + $0x20] sm:$0xf]  ;;  %v533_v16 = vld [vmem:[%s679_s5 + $0x24] sm:$0xf0] }
   0xf   : > { %v257_v2 = vld [vmem:[%s246_s28 + $0x10] sm:$0x3]  ;;  %v527_v7 = vld [vmem:[%s246_s28 + $0x8] sm:$0xff]  ;;  %v526_v8 = vld [vmem:[%s246_s28] sm:$0xff]  ;;  %v520_v17 = vor.u32 %v534_v12, %v517_v14  ;;  %v508_v20 = vor.u32 %v533_v16, %v507_v15  ;;  %vm380_vm4 = vcmask 523264   ;;  %s525_s23 = sshll.u32 %s682_s22, 3 }
  0x10   : > { %v274_v4 = vunpack.c.l.b16 %v257_v2  ;;  %v532_v18 = vld [vmem:[%s679_s5 + $0x24] sm:$0xf]  ;;  %v509_v19 = vld [vmem:[%s679_s5 + $0x28] sm:$0xf0]  ;;  %388 = vmatpush.bf16.msra.mxu2 %v516_v13  ;;  %v499_v22 = vld [vmem:[%s679_s5 + $0x10] sm:$0xf]  ;;  %s251_s26 = scalar_lea.vmem %s680_s6, %s525_s23 }
  0x11   : > { %401 = vmatpush.bf16.msra.mxu3 %v520_v17  ;;  %v512_v21 = vor.u32 %v532_v18, %v509_v19  ;;  %v531_v23 = vld [vmem:[%s679_s5 + $0x14] sm:$0xf0]  ;;  %v530_v24 = vld [vmem:[%s679_s5 + $0x14] sm:$0xf]  ;;  %v501_v25 = vld [vmem:[%s679_s5 + $0x18] sm:$0xf0] }
  0x12   : > { %v277_v5 = vpack.c.b16 %v274_v4, %v274_v4  ;;  %v500_v26 = vor.u32 %v531_v23, %v499_v22  ;;  %v504_v27 = vor.u32 %v530_v24, %v501_v25  ;;  %v302_v35 = vld [vmem:[%s677_s3] sm:$0x3]  ;;  %v529_v37 = vld [vmem:[%s679_s5 + $0x4] sm:$0xf0]  ;;  %v528_v38 = vld [vmem:[%s679_s5 + $0x4] sm:$0xf] }
  0x13   : > { %v491_v36 = vld [vmem:[%s679_s5] sm:$0xf]  ;;  %v493_v40 = vld [vmem:[%s679_s5 + $0x8] sm:$0xf0] }
  0x14   : > { %v286_v6 = vsel %vm284_vm0, %v277_v5, 0  ;;  %389 = vmatpush.bf16.msra.mxu2 %v508_v20  ;;  %v492_v39 = vor.u32 %v529_v37, %v491_v36  ;;  %v496_v41 = vor.u32 %v528_v38, %v493_v40 }
  0x15   : > { %307 = vperm.xlu0 %546, %v304_v3   ;;  %293 = vmatpush.bf16.msra.mxu0 %v286_v6 }
  0x16   : > { %402 = vmatpush.bf16.msra.mxu3 %v512_v21 }
  0x18   : > { %390 = vmatpush.bf16.msra.mxu2 %v500_v26 }
  0x19   : > { %294 = vmatpush.bf16.msra.mxu0 %v527_v7 }
  0x1a   : > { %403 = vmatpush.bf16.msra.mxu3 %v504_v27 }
  0x1c   : > { %391 = vmatpush.bf16.msra.mxu2 %v492_v39 }
  0x1d   : > { %295 = vmatpush.bf16.msra.mxu0 %v526_v8 }
  0x1e   : > { %404 = vmatpush.bf16.msra.mxu3 %v496_v41 }
  0x20   : > { %487 = vmatmul.msk.bf16.vlgmr.msra.gmra.mxu0 %vm280_vm1, %v258_v9 }
  0x7f   : > { %v263_v28 = vpop.permute.xlu0 %262 }
  0x87   : > { %v308_v42 = vpop.permute.xlu0 %307 }
  0x9d   : > { %v297_v29 = vpop.f32.mrf.mxu0 }
  0x9e   : > { %v298_v30 = vadd.f32 %v297_v29, %v263_v28 }
  0xa0   : > { %v301_v31 = vmax.f32 %v298_v30, 0.0 }
  0xa2   : > { %v303_v32 = vpack.c.bf16 %v301_v31, %v301_v31 }
  0xa4   : > { %v316_v33 = vsel %vm314_vm2, %v303_v32, 0 }
  0xa5   : > { %v299_v34 = vpop.f32.mrf.mxu0  ;;  %325 = vmatpush.bf16.msra.mxu1 %v316_v33 }
  0xa8   : > { %488 = vmatmul.msk.bf16.vlgmr.msra.gmra.mxu1 %vm310_vm3, %v302_v35 }
 0x125   : > { %v327_v43 = vpop.f32.mrf.mxu1 }
 0x126   : > { %v328_v44 = vadd.f32 %v327_v43, %v308_v42 }
 0x128   : > { %v331_v45 = vpack.c.bf16 %v328_v44, %v328_v44 }
 0x12a   : > { %521 = vmatmul.msk.bf16.vlgmr.msra.gmra.mxu2 %vm380_vm4, %v331_v45  ;;  %522 = vmatmul.msk.bf16.vlgmr.msra.gmra.mxu3 %vm380_vm4, %v331_v45 }
 0x12d   : > { %v329_v46 = vpop.f32.mrf.mxu1 }
 0x1ad   : > { %v393_v47 = vpop.f32.mrf.mxu2  ;;  %v406_v48 = vpop.f32.mrf.mxu3 }
 0x1ae   : > { %v412_v49 = vrot.slane %v406_v48, 4 }
 0x1b0   : > { %v413_v50 = vsel %vm314_vm2, %v393_v47, %v412_v49 }
 0x1b1   : > { %415 = vst [vmem:[%s251_s26] sm:$0x77] %v413_v50 }
 0x1b5   : > { %v395_v51 = vpop.f32.mrf.mxu2  ;;  %v408_v52 = vpop.f32.mrf.mxu3 }
 0x1b6 PF: > { %s16_s21 = sadd.s32 1, %s553_s21  }
 0x1b7   : > { %p13_p4 = scmp.ge.s32.totalorder %s16_s21, 4  }
 0x1b9   :  { %15 = sbr.rel (!%p13_p4) target bundleno = 1 (0x1), region = 74 }

</bundles_post_ra>
